<compile_context>
chip_gen: v7x
topology: tpu7x:2x2x1
jax: 0.10.0
libtpu: 0.0.40
codegen_flags: <defaults>
</compile_context>

<pallas_src>
import math
import jax
import jax.numpy as jnp
from jax.experimental import pallas as pl
from jax.experimental.pallas import tpu as pltpu

INPUT_SIZE = 10 + 10 + 22 + 9 + 3  # 54
H1, H2, H3, OUT = 256, 128, 128, 80
BN_EPS = 1e-5
MAX_TILE_B = 1024   # per-step VMEM at 1024 rows is only a few MiB


def _round_up(n, m):
    return ((n + m - 1) // m) * m


def _epilogue_dtype(use_bf16=True):
    """bf16 bias+ReLU epilogue on chips with a bf16 VPU (v6e/v7x), f32 on v5e."""
    if not use_bf16:
        return jnp.float32
    try:
        kind = jax.devices()[0].device_kind.lower()
    except Exception:
        return jnp.float32
    return jnp.bfloat16 if ("v6" in kind or "v7" in kind) else jnp.float32


def _choose_batch_tile(B, max_tile=MAX_TILE_B):
    """Fewest tiles respecting max_tile, >=2 tiles when there's enough work
    (both v7x TensorCores), tile rounded to a sublane-friendly multiple of 8,
    minimizing padded rows (Pallas masks the partial last block)."""
    ntiles = max(1, pl.cdiv(B, max_tile), min(2, B // 8))
    if ntiles == 1:
        return B, 1                         # full-dim block: always legal, zero padding
    tb = _round_up(pl.cdiv(B, ntiles), 8)
    return tb, pl.cdiv(B, tb)


# ---------------------------------------------------------------------------
# Kernel: one (tb, 54) f32 batch tile -> (tb, 80) f32 output tile.
# Weights bf16 (MXU inputs), f32 accumulation; bias+ReLU epilogue in bf16 on
# v6e/v7x (bias dtype bf16) or f32 on v5e (bias dtype f32).
# ---------------------------------------------------------------------------
def tetris_kernel(x_ref,
                  w1_ref, b1_ref,
                  w2_ref, b2_ref,
                  w3_ref, b3_ref,
                  w4_ref, b4_ref,
                  o_ref):
    mxu_dtype = w1_ref.dtype

    def bias_relu(acc_f32, b_ref):
        if b_ref.dtype == jnp.bfloat16:
            # Packed bf16 VALU: 2x elements per vreg on v6e/v7x.
            h = acc_f32.astype(jnp.bfloat16) + b_ref[...]
            return jnp.maximum(h, 0).astype(mxu_dtype)
        h = jnp.maximum(acc_f32 + b_ref[...], 0.0)
        return h.astype(mxu_dtype)

    # Cast the input tile in-kernel (no wrapper pad/convert pass over HBM).
    x = x_ref[...].astype(mxu_dtype)

    # fc1 (+ folded bn1) -> relu   (dropout = identity in eval mode)
    # TODO(synk): fc1 bias could be folded into the matmul via an injected ones
    # column; skipped to keep the (B, 54) input unpadded and the kernel simple.
    h = bias_relu(jnp.dot(x, w1_ref[...], preferred_element_type=jnp.float32), b1_ref)
    # fc2 (+ folded bn2) -> relu
    h = bias_relu(jnp.dot(h, w2_ref[...], preferred_element_type=jnp.float32), b2_ref)
    # fc3 (+ folded bn3) -> relu
    h = bias_relu(jnp.dot(h, w3_ref[...], preferred_element_type=jnp.float32), b3_ref)
    # fc4 (no activation); written straight to the (tb, 80) output block.
    o_ref[...] = (
        jnp.dot(h, w4_ref[...], preferred_element_type=jnp.float32) + b4_ref[...]
    )


# ---------------------------------------------------------------------------
# Parameter construction (matches the PyTorch module's init)
# ---------------------------------------------------------------------------
def xavier_uniform(key, fan_in, fan_out):
    # nn.init.xavier_uniform_ on a (fan_out, fan_in) weight; stored transposed
    # (fan_in, fan_out) so each layer is x @ W.
    limit = math.sqrt(6.0 / (fan_in + fan_out))
    return jax.random.uniform(
        key, (fan_in, fan_out), jnp.float32, minval=-limit, maxval=limit
    )


def linear_bias(key, fan_in, fan_out):
    # PyTorch default Linear bias init: U(-1/sqrt(fan_in), 1/sqrt(fan_in))
    bound = 1.0 / math.sqrt(fan_in)
    return jax.random.uniform(
        key, (1, fan_out), jnp.float32, minval=-bound, maxval=bound
    )


def make_params(key):
    keys = jax.random.split(key, 8)
    params = {}
    dims = [(INPUT_SIZE, H1), (H1, H2), (H2, H3), (H3, OUT)]
    for i, (fi, fo) in enumerate(dims):
        params[f"w{i + 1}"] = xavier_uniform(keys[2 * i], fi, fo)
        params[f"b{i + 1}"] = linear_bias(keys[2 * i + 1], fi, fo)
    # BatchNorm1d defaults: gamma=1, beta=0, running_mean=0, running_var=1
    for i, width in enumerate([H1, H2, H3]):
        gamma = jnp.ones((1, width), jnp.float32)
        beta = jnp.zeros((1, width), jnp.float32)
        r_mean = jnp.zeros((1, width), jnp.float32)
        r_var = jnp.ones((1, width), jnp.float32)
        scale = gamma / jnp.sqrt(r_var + BN_EPS)
        shift = beta - r_mean * scale
        params[f"s{i + 1}"] = scale
        params[f"t{i + 1}"] = shift
    return params


def prepare_kernel_params(params, use_bf16=True, fold_bn=True,
                          epilogue_dtype=jnp.float32):
    """Fold eval-mode BN into the linear layers (when fold_bn) and cast dtypes.
    (x@W + b)*s + t  ==  x@(W*s) + (b*s + t)."""
    mat_dtype = jnp.bfloat16 if use_bf16 else jnp.float32
    if not use_bf16:
        epilogue_dtype = jnp.float32

    if fold_bn:
        w1 = params["w1"] * params["s1"]
        b1 = params["b1"] * params["s1"] + params["t1"]
        w2 = params["w2"] * params["s2"]
        b2 = params["b2"] * params["s2"] + params["t2"]
        w3 = params["w3"] * params["s3"]
        b3 = params["b3"] * params["s3"] + params["t3"]
    else:
        # batch == 1: the module skips BatchNorm entirely.
        w1, b1 = params["w1"], params["b1"]
        w2, b2 = params["w2"], params["b2"]
        w3, b3 = params["w3"], params["b3"]
    w4, b4 = params["w4"], params["b4"]

    return {
        "w1": w1.astype(mat_dtype), "b1": b1.astype(epilogue_dtype),
        "w2": w2.astype(mat_dtype), "b2": b2.astype(epilogue_dtype),
        "w3": w3.astype(mat_dtype), "b3": b3.astype(epilogue_dtype),
        "w4": w4.astype(mat_dtype), "b4": b4.astype(jnp.float32),
    }


# ---------------------------------------------------------------------------
# Wrapper: pick the batch tile, call the kernel.  No input pad/cast pass, no
# output slice pass.
# ---------------------------------------------------------------------------
def tetris_forward(x, params, *, use_bf16=True, max_tile=MAX_TILE_B):
    B = x.shape[0]
    kp = prepare_kernel_params(
        params, use_bf16=use_bf16, fold_bn=(B > 1),
        epilogue_dtype=_epilogue_dtype(use_bf16),
    )
    x = x.astype(jnp.float32)

    tb, nb = _choose_batch_tile(B, max_tile)

    def resident(arr):
        # Constant-block spec: weight/bias stays VMEM-resident across grid steps.
        return pl.BlockSpec(arr.shape, lambda i: (0, 0))

    in_specs = [
        pl.BlockSpec((tb, INPUT_SIZE), lambda i: (i, 0)),   # x tile (f32, 54 wide)
        resident(kp["w1"]), resident(kp["b1"]),             # fc1 (+bn1 folded)
        resident(kp["w2"]), resident(kp["b2"]),             # fc2 (+bn2 folded)
        resident(kp["w3"]), resident(kp["b3"]),             # fc3 (+bn3 folded)
        resident(kp["w4"]), resident(kp["b4"]),             # fc4
    ]
    out_spec = pl.BlockSpec((tb, OUT), lambda i: (i, 0))

    itemsize = 2 if use_bf16 else 4
    mm_terms = INPUT_SIZE * H1 + H1 * H2 + H2 * H3 + H3 * OUT
    weight_bytes = mm_terms * itemsize + (H1 + H2 + H3 + OUT) * 4
    cost = pl.CostEstimate(
        flops=2 * nb * tb * mm_terms,
        transcendentals=0,
        bytes_accessed=B * INPUT_SIZE * 4 + B * OUT * 4 + weight_bytes,
    )

    return pl.pallas_call(
        tetris_kernel,
        out_shape=jax.ShapeDtypeStruct((B, OUT), jnp.float32),
        grid=(nb,),
        in_specs=in_specs,
        out_specs=out_spec,
        compiler_params=pltpu.CompilerParams(
            dimension_semantics=("parallel",),
        ),
        cost_estimate=cost,
    )(
        x,
        kp["w1"], kp["b1"],
        kp["w2"], kp["b2"],
        kp["w3"], kp["b3"],
        kp["w4"], kp["b4"],
    )


# ---------------------------------------------------------------------------
# References
# ---------------------------------------------------------------------------
def reference_forward_f32(x, params):
    """Exact eval-mode module semantics in f32 (unfused BN, batch > 1 path)."""
    h = x @ params["w1"] + params["b1"]
    h = jnp.maximum(h * params["s1"] + params["t1"], 0.0)
    h = h @ params["w2"] + params["b2"]
    h = jnp.maximum(h * params["s2"] + params["t2"], 0.0)
    h = h @ params["w3"] + params["b3"]
    h = jnp.maximum(h * params["s3"] + params["t3"], 0.0)
    return h @ params["w4"] + params["b4"]


def reference_forward_fused(x, kp):
    """Same fused/bf16 math as the kernel, in plain JAX."""
    mxu = kp["w1"].dtype

    def bias_relu(acc, b):
        if b.dtype == jnp.bfloat16:
            return jnp.maximum(acc.astype(jnp.bfloat16) + b, 0).astype(mxu)
        return jnp.maximum(acc + b, 0.0).astype(mxu)

    xb = x.astype(mxu)
    h = bias_relu(jnp.dot(xb, kp["w1"], preferred_element_type=jnp.float32), kp["b1"])
    h = bias_relu(jnp.dot(h, kp["w2"], preferred_element_type=jnp.float32), kp["b2"])
    h = bias_relu(jnp.dot(h, kp["w3"], preferred_element_type=jnp.float32), kp["b3"])
    return jnp.dot(h, kp["w4"], preferred_element_type=jnp.float32) + kp["b4"]


if __name__ == "__main__":
    key = jax.random.PRNGKey(0)
    k_params, k_x, k_x2 = jax.random.split(key, 3)
    params = make_params(k_params)
    kp = prepare_kernel_params(
        params, use_bf16=True, fold_bn=True, epilogue_dtype=_epilogue_dtype(True)
    )

    # Small demo batch (single full-dim block, zero padded rows).
    batch = 4
    x = jax.random.normal(k_x, (batch, INPUT_SIZE), jnp.float32)
    out = jax.block_until_ready(tetris_forward(x, params))
    assert out.shape == (batch, OUT)
    assert jnp.allclose(out, reference_forward_fused(x, kp), atol=1e-2, rtol=1e-2)
    assert jnp.allclose(out, reference_forward_f32(x, params), atol=0.1, rtol=5e-2)

    # Larger batch exercises the multi-step batch grid (tb=304, grid=(2,),
    # only 8 masked pad rows instead of 424).
    batch2 = 600
    x2 = jax.random.normal(k_x2, (batch2, INPUT_SIZE), jnp.float32)
    out2 = jax.block_until_ready(tetris_forward(x2, params))
    assert out2.shape == (batch2, OUT)
    assert jnp.allclose(out2, reference_forward_fused(x2, kp), atol=1e-2, rtol=1e-2)
    assert jnp.allclose(out2, reference_forward_f32(x2, params), atol=0.1, rtol=5e-2)

    # TODO(synk): training-mode input noise (torch.randn_like*0.01) and
    # Dropout(0.1) are not implemented; kernel reproduces eval()-mode forward.
    print("KERNEL_OK")
</pallas_src>

<mosaic_0001>
module attributes {stable_mosaic.version = 11 : i64} {
  func.func @tetris_kernel(%arg0: i32, %arg1: memref<4x54xf32, #tpu.memory_space<vmem>>, %arg2: memref<54x256xbf16, #tpu.memory_space<vmem>>, %arg3: memref<1x256xf32, #tpu.memory_space<vmem>>, %arg4: memref<256x128xbf16, #tpu.memory_space<vmem>>, %arg5: memref<1x128xf32, #tpu.memory_space<vmem>>, %arg6: memref<128x128xbf16, #tpu.memory_space<vmem>>, %arg7: memref<1x128xf32, #tpu.memory_space<vmem>>, %arg8: memref<128x80xbf16, #tpu.memory_space<vmem>>, %arg9: memref<1x80xf32, #tpu.memory_space<vmem>>, %arg10: memref<4x80xf32, #tpu.memory_space<vmem>>) attributes {dimension_semantics = [#tpu.dimension_semantics<parallel>], iteration_bounds = array<i64: 1>, scalar_prefetch = 0 : i64, scratch_operands = 0 : i64, tpu.core_type = #tpu.core_type<tc>, window_params = [{transform_indices = @transform_0, window_bounds = array<i64: 4, 54>}, {pipeline_mode = #tpu.pipeline_mode<synchronous>, transform_indices = @transform_1, window_bounds = array<i64: 54, 256>}, {pipeline_mode = #tpu.pipeline_mode<synchronous>, transform_indices = @transform_2, window_bounds = array<i64: 1, 256>}, {pipeline_mode = #tpu.pipeline_mode<synchronous>, transform_indices = @transform_3, window_bounds = array<i64: 256, 128>}, {pipeline_mode = #tpu.pipeline_mode<synchronous>, transform_indices = @transform_4, window_bounds = array<i64: 1, 128>}, {pipeline_mode = #tpu.pipeline_mode<synchronous>, transform_indices = @transform_5, window_bounds = array<i64: 128, 128>}, {pipeline_mode = #tpu.pipeline_mode<synchronous>, transform_indices = @transform_6, window_bounds = array<i64: 1, 128>}, {pipeline_mode = #tpu.pipeline_mode<synchronous>, transform_indices = @transform_7, window_bounds = array<i64: 128, 80>}, {pipeline_mode = #tpu.pipeline_mode<synchronous>, transform_indices = @transform_8, window_bounds = array<i64: 1, 80>}, {transform_indices = @transform_9, window_bounds = array<i64: 4, 80>}]} {
    %c0 = arith.constant 0 : index
    %c0_0 = arith.constant 0 : index
    %0 = vector.load %arg1[%c0, %c0_0] : memref<4x54xf32, #tpu.memory_space<vmem>>, vector<4x54xf32>
    %1 = arith.truncf %0 : vector<4x54xf32> to vector<4x54xbf16>
    %c0_1 = arith.constant 0 : index
    %c0_2 = arith.constant 0 : index
    %2 = vector.load %arg2[%c0_1, %c0_2] : memref<54x256xbf16, #tpu.memory_space<vmem>>, vector<54x256xbf16>
    %cst = arith.constant dense<0.000000e+00> : vector<4x256xf32>
    %3 = tpu.matmul %1, %2, %cst {dimension_numbers = #tpu.dot_dimension_numbers<[1], [0], [0], [1], [0, 0, 1, 1], [], []>} : vector<4x54xbf16>, vector<54x256xbf16>, vector<4x256xf32> -> vector<4x256xf32>
    %c0_3 = arith.constant 0 : index
    %c0_4 = arith.constant 0 : index
    %4 = vector.load %arg3[%c0_3, %c0_4] : memref<1x256xf32, #tpu.memory_space<vmem>>, vector<1x256xf32>
    %5 = vector.broadcast %4 : vector<1x256xf32> to vector<4x256xf32>
    %6 = arith.addf %3, %5 : vector<4x256xf32>
    %cst_5 = arith.constant 0.000000e+00 : f32
    %7 = vector.broadcast %cst_5 : f32 to vector<4x256xf32>
    %8 = arith.maximumf %6, %7 : vector<4x256xf32>
    %9 = arith.truncf %8 : vector<4x256xf32> to vector<4x256xbf16>
    %c0_6 = arith.constant 0 : index
    %c0_7 = arith.constant 0 : index
    %10 = vector.load %arg4[%c0_6, %c0_7] : memref<256x128xbf16, #tpu.memory_space<vmem>>, vector<256x128xbf16>
    %cst_8 = arith.constant dense<0.000000e+00> : vector<4x128xf32>
    %11 = tpu.matmul %9, %10, %cst_8 {dimension_numbers = #tpu.dot_dimension_numbers<[1], [0], [0], [1], [0, 0, 1, 1], [], []>} : vector<4x256xbf16>, vector<256x128xbf16>, vector<4x128xf32> -> vector<4x128xf32>
    %c0_9 = arith.constant 0 : index
    %c0_10 = arith.constant 0 : index
    %12 = vector.load %arg5[%c0_9, %c0_10] : memref<1x128xf32, #tpu.memory_space<vmem>>, vector<1x128xf32>
    %13 = vector.broadcast %12 : vector<1x128xf32> to vector<4x128xf32>
    %14 = arith.addf %11, %13 : vector<4x128xf32>
    %cst_11 = arith.constant 0.000000e+00 : f32
    %15 = vector.broadcast %cst_11 : f32 to vector<4x128xf32>
    %16 = arith.maximumf %14, %15 : vector<4x128xf32>
    %17 = arith.truncf %16 : vector<4x128xf32> to vector<4x128xbf16>
    %c0_12 = arith.constant 0 : index
    %c0_13 = arith.constant 0 : index
    %18 = vector.load %arg6[%c0_12, %c0_13] : memref<128x128xbf16, #tpu.memory_space<vmem>>, vector<128x128xbf16>
    %cst_14 = arith.constant dense<0.000000e+00> : vector<4x128xf32>
    %19 = tpu.matmul %17, %18, %cst_14 {dimension_numbers = #tpu.dot_dimension_numbers<[1], [0], [0], [1], [0, 0, 1, 1], [], []>} : vector<4x128xbf16>, vector<128x128xbf16>, vector<4x128xf32> -> vector<4x128xf32>
    %c0_15 = arith.constant 0 : index
    %c0_16 = arith.constant 0 : index
    %20 = vector.load %arg7[%c0_15, %c0_16] : memref<1x128xf32, #tpu.memory_space<vmem>>, vector<1x128xf32>
    %21 = vector.broadcast %20 : vector<1x128xf32> to vector<4x128xf32>
    %22 = arith.addf %19, %21 : vector<4x128xf32>
    %cst_17 = arith.constant 0.000000e+00 : f32
    %23 = vector.broadcast %cst_17 : f32 to vector<4x128xf32>
    %24 = arith.maximumf %22, %23 : vector<4x128xf32>
    %25 = arith.truncf %24 : vector<4x128xf32> to vector<4x128xbf16>
    %c0_18 = arith.constant 0 : index
    %c0_19 = arith.constant 0 : index
    %26 = vector.load %arg8[%c0_18, %c0_19] : memref<128x80xbf16, #tpu.memory_space<vmem>>, vector<128x80xbf16>
    %cst_20 = arith.constant dense<0.000000e+00> : vector<4x80xf32>
    %27 = tpu.matmul %25, %26, %cst_20 {dimension_numbers = #tpu.dot_dimension_numbers<[1], [0], [0], [1], [0, 0, 1, 1], [], []>} : vector<4x128xbf16>, vector<128x80xbf16>, vector<4x80xf32> -> vector<4x80xf32>
    %c0_21 = arith.constant 0 : index
    %c0_22 = arith.constant 0 : index
    %28 = vector.load %arg9[%c0_21, %c0_22] : memref<1x80xf32, #tpu.memory_space<vmem>>, vector<1x80xf32>
    %29 = vector.broadcast %28 : vector<1x80xf32> to vector<4x80xf32>
    %30 = arith.addf %27, %29 : vector<4x80xf32>
    %c0_23 = arith.constant 0 : index
    %c0_24 = arith.constant 0 : index
    %31 = vector.load %arg10[%c0_23, %c0_24] : memref<4x80xf32, #tpu.memory_space<vmem>>, vector<4x80xf32>
    tpu.vector_store %arg10[%c0_23, %c0_24], %30 {strides = array<i32>} : memref<4x80xf32, #tpu.memory_space<vmem>>, vector<4x80xf32>,
    return
  }
  func.func @transform_0(%arg0: i32) -> (i32, i32) {
    %c0_i32 = arith.constant 0 : i32
    %c0_i32_0 = arith.constant 0 : i32
    return %arg0, %c0_i32 : i32, i32
  }
  func.func @transform_1(%arg0: i32) -> (i32, i32) {
    %c0_i32 = arith.constant 0 : i32
    %c0_i32_0 = arith.constant 0 : i32
    %c0_i32_1 = arith.constant 0 : i32
    return %c0_i32, %c0_i32_0 : i32, i32
  }
  func.func @transform_2(%arg0: i32) -> (i32, i32) {
    %c0_i32 = arith.constant 0 : i32
    %c0_i32_0 = arith.constant 0 : i32
    %c0_i32_1 = arith.constant 0 : i32
    return %c0_i32, %c0_i32_0 : i32, i32
  }
  func.func @transform_3(%arg0: i32) -> (i32, i32) {
    %c0_i32 = arith.constant 0 : i32
    %c0_i32_0 = arith.constant 0 : i32
    %c0_i32_1 = arith.constant 0 : i32
    return %c0_i32, %c0_i32_0 : i32, i32
  }
  func.func @transform_4(%arg0: i32) -> (i32, i32) {
    %c0_i32 = arith.constant 0 : i32
    %c0_i32_0 = arith.constant 0 : i32
    %c0_i32_1 = arith.constant 0 : i32
    return %c0_i32, %c0_i32_0 : i32, i32
  }
  func.func @transform_5(%arg0: i32) -> (i32, i32) {
    %c0_i32 = arith.constant 0 : i32
    %c0_i32_0 = arith.constant 0 : i32
    %c0_i32_1 = arith.constant 0 : i32
    return %c0_i32, %c0_i32_0 : i32, i32
  }
  func.func @transform_6(%arg0: i32) -> (i32, i32) {
    %c0_i32 = arith.constant 0 : i32
    %c0_i32_0 = arith.constant 0 : i32
    %c0_i32_1 = arith.constant 0 : i32
    return %c0_i32, %c0_i32_0 : i32, i32
  }
  func.func @transform_7(%arg0: i32) -> (i32, i32) {
    %c0_i32 = arith.constant 0 : i32
    %c0_i32_0 = arith.constant 0 : i32
    %c0_i32_1 = arith.constant 0 : i32
    return %c0_i32, %c0_i32_0 : i32, i32
  }
  func.func @transform_8(%arg0: i32) -> (i32, i32) {
    %c0_i32 = arith.constant 0 : i32
    %c0_i32_0 = arith.constant 0 : i32
    %c0_i32_1 = arith.constant 0 : i32
    return %c0_i32, %c0_i32_0 : i32, i32
  }
  func.func @transform_9(%arg0: i32) -> (i32, i32) {
    %c0_i32 = arith.constant 0 : i32
    %c0_i32_0 = arith.constant 0 : i32
    return %arg0, %c0_i32 : i32, i32
  }
}

</mosaic_0001>

<bundles_post_ra>
// kernel: tpu_custom_call.1
= control target key start
LH: loop header
LB: loop body
LE: loop exit
PB: predicated region body
PF: predicated region fallthrough
CT: control target
= control target key end

     0   :  { %14 = vsyncpa [#allocation3], 0  ;;  %s1076_s0 = inlined_call_operand.hbm [shape: f32[4,54], index: 0, kind: input, shape index: {}]   ;;  %s1077_s1 = inlined_call_operand.vmem [shape: bf16[54,256], index: 1, kind: input, shape index: {}]   ;;  %s1078_s2 = inlined_call_operand.vmem [shape: f32[1,256], index: 2, kind: input, shape index: {}]   ;;  %s1079_s3 = inlined_call_operand.hbm [shape: bf16[256,128], index: 3, kind: input, shape index: {}]   ;;  %s1080_s4 = inlined_call_operand.hbm [shape: f32[1,128], index: 4, kind: input, shape index: {}]   ;;  %s1081_s5 = inlined_call_operand.vmem [shape: bf16[128,128], index: 5, kind: input, shape index: {}]   ;;  %s1082_s6 = inlined_call_operand.vmem [shape: f32[1,128], index: 6, kind: input, shape index: {}]   ;;  %s1083_s7 = inlined_call_operand.vmem [shape: bf16[128,80], index: 7, kind: input, shape index: {}]   ;;  %s1084_s8 = inlined_call_operand.vmem [shape: f32[1,80], index: 8, kind: input, shape index: {}]   ;;  %s1085_s9 = inlined_call_operand.hbm [shape: f32[4,80], index: 9, kind: output, shape index: {}]  }
   0x1   :  { %15 = vsyncpa [#allocation6], 0 }
   0x2   :  { %16 = vsyncpa [#allocation4], 0  ;;  %s873_s30 = smov [#allocation5]   ;;  %s779_s13 = scalar_lea.hbm %s1079_s3, 2048 }
   0x3   :  { %s36_s10 = sshll.u32 %s873_s30, 4  ;;  %p780_p0 = scmp.ne.s32.totalorder %s1079_s3, %s779_s13  ;;  %s37_s10 = int_to_ptr.vmem [resolvable:$true] %s36_s10 }
   0x4   :  { %p783_p1 = scmp.lt.u32.totalorder %s779_s13, %s1079_s3 }
   0x6   :  { %p785_p2 = pnand %p783_p1, %p780_p0 }
   0x8   :  { %788 = shalt.err (!%p785_p2)
}
   0x9   :  { %s789_s18 = scalar_lea.vmem %s37_s10, 2048  ;;  %p794_p4 = scmp.lt.s32.totalorder %s37_s10, %s37_s10 }
   0xa   :  { %p790_p3 = scmp.ne.s32.totalorder %s37_s10, %s789_s18  ;;  %p795_p5 = scmp.lt.s32.totalorder %s789_s18, %s789_s18 }
   0xc   :  { %p796_p6 = por %p795_p5, %p794_p4 }
   0xe   :  { %p797_p7 = pnand %p796_p6, %p790_p3 }
  0x10   :  { %800 = shalt.err (!%p797_p7)
}
  0x11   :  { %s874_s19 = smov 64   ;;  %s875_s20 = smov 4  }
  0x12   :  { %42 = dma.hbm_to_vmem [thread:$0]  %s1079_s3, 2048, %s37_s10, [#allocation6], %s874_s19, %s874_s19, %s875_s20  }
  0x13   :  { %s876_s23 = smov [#allocation2]   ;;  %s877_s25 = smov [#allocation7]  }
  0x14   :  { %s23_s24 = sshll.u32 %s876_s23, 4  ;;  %s49_s26 = sshll.u32 %s877_s25, 4  ;;  %s24_s24 = int_to_ptr.vmem [resolvable:$true] %s23_s24  ;;  %s50_s26 = int_to_ptr.vmem [resolvable:$true] %s49_s26 }
  0x15   :  { %s801_s29 = scalar_lea.hbm %s1076_s0, 64 }
  0x16   :  { %p802_p8 = scmp.ne.s32.totalorder %s1076_s0, %s801_s29  ;;  %p805_p9 = scmp.lt.u32.totalorder %s801_s29, %s1076_s0 }
  0x18   :  { %p807_p10 = pnand %p805_p9, %p802_p8 }
  0x1a   :  { %810 = shalt.err (!%p807_p10)
}
  0x1b   :  { %s811_s3 = scalar_lea.vmem %s24_s24, 64  ;;  %p816_p12 = scmp.lt.s32.totalorder %s24_s24, %s24_s24 }
  0x1c   :  { %p812_p11 = scmp.ne.s32.totalorder %s24_s24, %s811_s3  ;;  %p817_p13 = scmp.lt.s32.totalorder %s811_s3, %s811_s3 }
  0x1e   :  { %p818_p0 = por %p817_p13, %p816_p12 }
  0x20   :  { %p819_p1 = pnand %p818_p0, %p812_p11 }
  0x22   :  { %822 = shalt.err (!%p819_p1)
}
  0x23   :  { %26 = dma.hbm_to_vmem [thread:$0]  %s1076_s0, 64, %s24_s24, [#allocation3]  }
  0x24   :  { %s823_s17 = scalar_lea.hbm %s1080_s4, 16 }
  0x25   :  { %p824_p2 = scmp.ne.s32.totalorder %s1080_s4, %s823_s17  ;;  %p827_p3 = scmp.lt.u32.totalorder %s823_s17, %s1080_s4 }
  0x27   :  { %p829_p4 = pnand %p827_p3, %p824_p2 }
  0x29   :  { %832 = shalt.err (!%p829_p4)
}
  0x2a   :  { %s833_s22 = scalar_lea.vmem %s50_s26, 16  ;;  %s837_s23 = scalar_lea.vmem %s50_s26, 32 }
  0x2b   :  { %p834_p5 = scmp.ne.s32.totalorder %s50_s26, %s833_s22  ;;  %p838_p6 = scmp.lt.s32.totalorder %s50_s26, %s50_s26 }
  0x2c   :  { %p839_p7 = scmp.lt.s32.totalorder %s837_s23, %s833_s22 }
  0x2e   :  { %p840_p8 = por %p839_p7, %p838_p6 }
  0x30   :  { %p841_p9 = pnand %p840_p8, %p834_p5 }
  0x32   :  { %844 = shalt.err (!%p841_p9)
}
  0x33   :  { %52 = dma.hbm_to_vmem [thread:$0]  %s1080_s4, 16, %s50_s26, [#allocation6]  }
  0x34   :  { %867 = dma.done.wait [#allocation3], 64  }
  0x35   :  { %868 = vsyncadd [#allocation3], 4294967232 }
  0x36   :  { %869 = dma.done.wait [#allocation6], 2064  }
  0x37   :  { %870 = vsyncadd [#allocation6], 4294965232  ;;  %v878_v0 = vmov 0   ;;  %v736_v1 = vld [vmem:[%s1077_s1 + $0x4] ss:$8 sps:$4 sm:$0xff]   ;;  %vm131_vm0 = vcmask 1042432   ;;  %v82_v36 = vlaneseq }
  0x38   :  { %170 = vmatprep.mubr.bf16.mxu0 %v878_v0  ;;  %v738_v2 = vld [vmem:[%s1077_s1] ss:$8 sps:$4 sm:$0xff]   ;;  %138 = vmatprep.subr.bf16.mxu0 %v736_v1  ;;  %v739_v3 = vld [vmem:[%s1077_s1 + $0x14] ss:$8 sps:$4 sm:$0xff]   ;;  %v741_v4 = vld [vmem:[%s1077_s1 + $0x10] ss:$8 sps:$4 sm:$0xff]  }
  0x39   :  { %139 = vmatpush1.bf16.msra.mxu0 %v738_v2  ;;  %v742_v5 = vld [vmem:[%s1077_s1 + $0x24] ss:$8 sps:$4 sm:$0xff]   ;;  %v79_v6 = vld [vmem:[%s1077_s1 + $0x30] sm:$0x77]  ;;  %v744_v7 = vld [vmem:[%s1077_s1 + $0x20] ss:$8 sps:$4 sm:$0xff]  }
  0x3a   :  { %140 = vmatprep.subr.bf16.mxu0 %v739_v3  ;;  %v747_v8 = vld [vmem:[#allocation5 + $0x40] sm:$0xff]   ;;  %v749_v10 = vld [vmem:[#allocation5 + $0x48] sm:$0xff]   ;;  %v609_v11 = vcombine.high %v79_v6, %v79_v6  ;;  %v608_v12 = vcombine.low %v79_v6, %v79_v6  ;;  %v751_v14 = vld [vmem:[#allocation5 + $0x50] sm:$0xff]   ;;  %vm127_vm1 = vcmask 441344   ;;  %v879_v30 = vmov 0.0   ;;  %s881_s25 = smov [#allocation8]  }
  0x3b   :  { %v748_v9 = vld [vmem:[#allocation5] sm:$0xff]   ;;  %647 = vmatprep.subr.bf16.mxu1 %v747_v8  ;;  %v750_v13 = vld [vmem:[#allocation5 + $0x8] sm:$0xff]   ;;  %v71_v15 = vld [vmem:[#allocation2] sm:$0xf]  ;;  %v83_v37 = vshrl.u32 %v82_v36, 7  ;;  %vm880_vm2 = vmmov 0  }
  0x3c   :  { %648 = vmatpush3.bf16.msra.mxu1 %v748_v9  ;;  %v133_v16 = vsel %vm131_vm0, %v608_v12, 0  ;;  %v752_v17 = vld [vmem:[#allocation5 + $0x10] sm:$0xff]   ;;  %v753_v18 = vld [vmem:[#allocation5 + $0x58] sm:$0xff]   ;;  %v72_v19 = vpack.c.bf16 %v71_v15, %v71_v15  ;;  %v755_v21 = vld [vmem:[#allocation5 + $0x60] sm:$0xff]   ;;  %s592_s27 = sshll.u32 %s881_s25, 4  ;;  %vm584_vm3 = vcmask 650240   ;;  %s593_s27 = int_to_ptr.vmem [resolvable:$true] %s592_s27 }
  0x3d   :  { %141 = vmatpush1.bf16.msra.mxu0 %v741_v4  ;;  %649 = vmatprep.subr.bf16.mxu1 %v749_v10  ;;  %v754_v20 = vld [vmem:[#allocation5 + $0x18] sm:$0xff]   ;;  %v756_v22 = vld [vmem:[#allocation5 + $0x20] sm:$0xff]   ;;  %v757_v23 = vld [vmem:[#allocation5 + $0x68] sm:$0xff]   ;;  %v84_v38 = vsub.s32 0, %v83_v37  ;;  %v88_v40 = vsub.s32 1, %v83_v37  ;;  %p850_p11 = scmp.lt.s32.totalorder %s593_s27, %s593_s27 }
  0x3e   :  { %142 = vmatprep.subr.bf16.mxu0 %v742_v5  ;;  %v758_v24 = vld [vmem:[#allocation5 + $0x28] sm:$0xff]   ;;  %v759_v25 = vld [vmem:[#allocation5 + $0x70] sm:$0xff]   ;;  %v761_v27 = vld [vmem:[#allocation5 + $0x78] sm:$0xff]  }
  0x3f   :  { %v760_v26 = vld [vmem:[#allocation5 + $0x30] sm:$0xff]   ;;  %v762_v28 = vld [vmem:[#allocation5 + $0x38] sm:$0xff]   ;;  %v764_v31 = vld [vmem:[%s1081_s5 + $0x8] sm:$0xff]  }
  0x40   :  { %650 = vmatpush3.bf16.msra.mxu1 %v750_v13  ;;  %v763_v29 = vld [vmem:[%s1081_s5] sm:$0xff]   ;;  %v765_v32 = vld [vmem:[%s1081_s5 + $0x10] sm:$0xff]   ;;  %v766_v33 = vld [vmem:[%s1081_s5 + $0x18] sm:$0xff]  }
  0x41   :  { %143 = vmatpush1.bf16.msra.mxu0 %v744_v7  ;;  %651 = vmatprep.subr.bf16.mxu1 %v751_v14  ;;  %v767_v34 = vld [vmem:[%s1081_s5 + $0x20] sm:$0xff]   ;;  %v768_v35 = vld [vmem:[%s1081_s5 + $0x28] sm:$0xff]   ;;  %v769_v53 = vld [vmem:[%s1081_s5 + $0x30] sm:$0xff]  }
  0x42   :  { %610 = vmatprep.subr.msk.bf16.mxu0 %vm131_vm0, %v609_v11  ;;  %v80_v39 = vld [vmem:[%s1078_s2] sm:$0x3]  ;;  %v770_v54 = vld [vmem:[%s1081_s5 + $0x38] sm:$0xff]   ;;  %v772_v56 = vld [vmem:[%s1083_s7 + $0x8] sm:$0xff]  }
  0x43   :  { %v85_v41 = vrot.slane %v80_v39, %v84_v38  ;;  %v89_v42 = vrot.slane %v80_v39, %v88_v40  ;;  %v771_v55 = vld [vmem:[%s1083_s7] sm:$0xff]   ;;  %v773_v57 = vld [vmem:[%s1083_s7 + $0x10] sm:$0xff]   ;;  %v774_v58 = vld [vmem:[%s1083_s7 + $0x18] sm:$0xff]  }
  0x44   :  { %652 = vmatpush3.bf16.msra.mxu1 %v752_v17  ;;  %v775_v59 = vld [vmem:[%s1083_s7 + $0x20] sm:$0xff]   ;;  %v776_v60 = vld [vmem:[%s1083_s7 + $0x28] sm:$0xff]   ;;  %v777_v6 = vld [vmem:[%s1083_s7 + $0x30] sm:$0xff]  }
  0x45   :  { %145 = vmatpush1.bf16.msra.mxu0 %v133_v16  ;;  %653 = vmatprep.subr.bf16.mxu1 %v753_v18  ;;  %v612_v62 = vld [vmem:[#allocation7] ss:$0 sm:$0xff]  ;;  %v778_v7 = vld [vmem:[%s1083_s7 + $0x38] sm:$0xff]   ;;  %v629_v8 = vld [vmem:[%s1082_s6] ss:$0 sm:$0xff]  ;;  %s845_s6 = scalar_lea.vmem %s593_s27, 64 }
  0x46   :  { %687 = vmatprep.subr.bf16.mxu0 %v879_v30  ;;  %v638_v16 = vld [vmem:[%s1084_s8] ss:$0 sm:$0xff]  ;;  %p846_p10 = scmp.ne.s32.totalorder %s593_s27, %s845_s6  ;;  %p851_p12 = scmp.lt.s32.totalorder %s845_s6, %s845_s6 }
  0x48   :  { %611 = vmatmul.mubr.msk.bf16.vlgmr.msra.gmra.mrb[0].mxu0 %vm127_vm1, %v72_v19  ;;  %654 = vmatpush3.bf16.msra.mxu1 %v754_v20  ;;  %p852_p13 = por %p851_p12, %p850_p11 }
  0x49   :  { %655 = vmatprep.subr.bf16.mxu1 %v755_v21  ;;  %688 = vmatpush3.bf16.msra.mxu0 %v763_v29 }
  0x4a   :  { %689 = vmatprep.subr.bf16.mxu0 %v879_v30  ;;  %703 = vmatprep.mubr.msk.bf16.mxu0 %vm880_vm2, %v879_v30  ;;  %p853_p0 = pnand %p852_p13, %p846_p10 }
  0x4c   :  { %656 = vmatpush3.bf16.msra.mxu1 %v756_v22 }
  0x4d   :  { %657 = vmatprep.subr.bf16.mxu1 %v757_v23  ;;  %690 = vmatpush3.bf16.msra.mxu0 %v764_v31 }
  0x4e   :  { %691 = vmatprep.subr.bf16.mxu0 %v879_v30 }
  0x50   :  { %658 = vmatpush3.bf16.msra.mxu1 %v758_v24 }
  0x51   :  { %659 = vmatprep.subr.bf16.mxu1 %v759_v25  ;;  %692 = vmatpush3.bf16.msra.mxu0 %v765_v32 }
  0x52   :  { %693 = vmatprep.subr.bf16.mxu0 %v879_v30 }
  0x54   :  { %660 = vmatpush3.bf16.msra.mxu1 %v760_v26 }
  0x55   :  { %661 = vmatprep.subr.bf16.mxu1 %v761_v27  ;;  %694 = vmatpush3.bf16.msra.mxu0 %v766_v33 }
  0x56   :  { %695 = vmatprep.subr.bf16.mxu0 %v879_v30 }
  0x58   :  { %662 = vmatpush3.bf16.msra.mxu1 %v762_v28 }
  0x59   :  { %707 = vmatprep.subr.bf16.mxu1 %v879_v30  ;;  %696 = vmatpush3.bf16.msra.mxu0 %v767_v34 }
  0x5a   :  { %697 = vmatprep.subr.bf16.mxu0 %v879_v30 }
  0x5d   :  { %698 = vmatpush3.bf16.msra.mxu0 %v768_v35 }
  0x5e   :  { %699 = vmatprep.subr.bf16.mxu0 %v879_v30 }
  0x61   :  { %700 = vmatpush3.bf16.msra.mxu0 %v769_v53 }
  0x62   :  { %701 = vmatprep.subr.bf16.mxu0 %v879_v30 }
  0x65   :  { %702 = vmatpush3.bf16.msra.mxu0 %v770_v54 }
 0x11b   :  { %v172_v43 = vpop.f32.mrb[0].mxu0 }
 0x11c   :  { %v173_v44 = vadd.f32 %v172_v43, %v85_v41  ;;  %v174_v45 = vpop.f32.mrb[1].mxu0 }
 0x11d   :  { %v175_v46 = vadd.f32 %v174_v45, %v89_v42  ;;  %v176_v47 = vpop.f32.mrb[2].mxu0 }
 0x11e   :  { %v179_v48 = vmax.f32 %v173_v44, 0.0  ;;  %v177_v49 = vpop.f32.mrb[3].mxu0 }
 0x11f   :  { %v180_v50 = vmax.f32 %v175_v46, 0.0 }
 0x120   :  { %v181_v52 = vpack.c.bf16 %v179_v48, %v179_v48 }
 0x121   :  { %v182_v51 = vpack.c.bf16 %v180_v50, %v180_v50 }
 0x123   :  { %350 = vmatprep.mubr.bf16.mxu1 %v182_v51 }
 0x124   :  { %351 = vmatmul.mubr.bf16.vlgmr.msra.gmra.mrb[0].mxu1 %v181_v52 }
 0x125   :  { %723 = vmatprep.mubr.msk.bf16.mxu1 %vm880_vm2, %v879_v30  ;;  %708 = vmatpush3.bf16.msra.mxu1 %v771_v55 }
 0x126   :  { %709 = vmatprep.subr.bf16.mxu1 %v879_v30 }
 0x129   :  { %710 = vmatpush3.bf16.msra.mxu1 %v772_v56 }
 0x12a   :  { %711 = vmatprep.subr.bf16.mxu1 %v879_v30 }
 0x12d   :  { %712 = vmatpush3.bf16.msra.mxu1 %v773_v57 }
 0x12e   :  { %713 = vmatprep.subr.bf16.mxu1 %v879_v30 }
 0x131   :  { %714 = vmatpush3.bf16.msra.mxu1 %v774_v58 }
 0x132   :  { %715 = vmatprep.subr.bf16.mxu1 %v879_v30 }
 0x135   :  { %716 = vmatpush3.bf16.msra.mxu1 %v775_v59 }
 0x136   :  { %717 = vmatprep.subr.bf16.mxu1 %v879_v30 }
 0x139   :  { %718 = vmatpush3.bf16.msra.mxu1 %v776_v60 }
 0x13a   :  { %719 = vmatprep.subr.bf16.mxu1 %v879_v30 }
 0x13d   :  { %720 = vmatpush3.bf16.msra.mxu1 %v777_v6 }
 0x13e   :  { %721 = vmatprep.subr.bf16.mxu1 %v879_v30 }
 0x141   :  { %722 = vmatpush3.bf16.msra.mxu1 %v778_v7 }
 0x1f7   :  { %v663_v61 = vpop.f32.mrb[0].mxu1 }
 0x1f8   :  { %v664_v63 = vpop.f32.mrb[1].mxu1 }
 0x1f9   :  { %v665_v0 = vadd.f32 %v664_v63, %v663_v61  ;;  %v666_v1 = vpop.f32.mrb[2].mxu1 }
 0x1fa   :  { %v667_v2 = vpop.f32.mrb[3].mxu1 }
 0x1fb   :  { %v353_v3 = vadd.f32 %v665_v0, %v612_v62 }
 0x1fd   :  { %v358_v4 = vmax.f32 %v353_v3, 0.0 }
 0x1ff   :  { %v359_v5 = vpack.c.bf16 %v358_v4, %v358_v4 }
 0x201   :  { %704 = vmatmul.mubr.bf16.vlgmr.msra.gmra.mrb[4].mxu0 %v359_v5 }
 0x2d4   :  { %v465_v9 = vpop.f32.mrb[4].mxu0 }
 0x2d5   :  { %v466_v10 = vadd.f32 %v629_v8, %v465_v9  ;;  %v705_v11 = vpop.f32.mrb[5].mxu0 }
 0x2d6   :  { %v468_v12 = vpop.f32.mrb[6].mxu0 }
 0x2d7   :  { %v471_v13 = vmax.f32 %v466_v10, 0.0  ;;  %v706_v14 = vpop.f32.mrb[7].mxu0 }
 0x2d9   :  { %v472_v15 = vpack.c.bf16 %v471_v13, %v471_v13 }
 0x2db   :  { %724 = vmatmul.mubr.bf16.vlgmr.msra.gmra.mrb[4].mxu1 %v472_v15 }
 0x3ae   :  { %v578_v17 = vpop.f32.mrb[4].mxu1 }
 0x3af   :  { %v579_v18 = vadd.f32 %v638_v16, %v578_v17  ;;  %v725_v19 = vpop.f32.mrb[5].mxu1 }
 0x3b0   :  { %v581_v20 = vpop.f32.mrb[6].mxu1 }
 0x3b1   :  { %v726_v21 = vpop.f32.mrb[7].mxu1  ;;  %585 = vst.msk [vmem:[#allocation8] sm:$0xf] %vm584_vm3, %v579_v18 }
 0x3b2   :  { %856 = shalt.err (!%p853_p0)
}
 0x3b3   :  { %s857_s8 = scalar_lea.hbm %s1085_s9, 64 }
 0x3b4   :  { %p858_p1 = scmp.ne.s32.totalorder %s1085_s9, %s857_s8  ;;  %p861_p2 = scmp.lt.u32.totalorder %s857_s8, %s1085_s9 }
 0x3b6   :  { %p863_p3 = pnand %p861_p2, %p858_p1 }
 0x3b8   :  { %866 = shalt.err (!%p863_p3)
}
 0x3b9   :  { %595 = dma.vmem_to_hbm [thread:$0]  %s593_s27, 64, %s1085_s9, [#allocation4]  }
 0x3ba   :  { %871 = dma.done.wait [#allocation4], 64  }
 0x3bb   :  { %872 = vsyncadd [#allocation4], 4294967232 }
 0x3bc   :  { %599 = vsyncpa [#allocation3], 1 }
 0x3bd   :  { %600 = vsyncpa [#allocation6], 1 }
 0x3be   :  { %601 = vsyncpa [#allocation4], 1 }

</bundles_post_ra>
